<compile_context>
chip_gen: v7x
topology: tpu7x:2x2x1
jax: 0.10.0
libtpu: 0.0.40
codegen_flags: <defaults>
</compile_context>

<pallas_src>
import jax
import jax.numpy as jnp
import numpy as np
from jax.experimental import pallas as pl
from jax.experimental.pallas import tpu as pltpu

# ---- static hyper-parameters (the torch `param` dict, syn-relation branch) ----
IN_DIM = 8        # param['in_dim']
GDIM = 16         # param['graph_dim']
HID = 16          # param['hidden_dim']
OUT_DIM = 4       # param['out_dim']
NUM_GRAPH = 3     # param['num_graph']
NUM_HOP = 2       # param['num_hop']
BETA = 0.3        # param['beta']
N_NODES = 16
GH = NUM_GRAPH * HID          # 48 = concatenated feature width = slab lane width

# ---- packed parameter slab layout: row offsets (all multiples of 8 so every
# ---- static sublane slice inside the kernel is aligned) ----
_WG, _BG = 0, 8               # (8,16), (1,16)
_WDST, _BGATE = 16, 32        # (16,3), (1,3)
_WSRC = 40                    # (3,16)
_W1, _B1 = 48, 56             # (8,16), (1,16)
_WMOD, _BMOD = 64, 112        # (48,48) block-diag, (1,48)
_W2, _B2 = 120, 168           # (48,4), (1,4)
SLAB_ROWS = 176


# --------------------------------------------------------------------------
# Fused kernel: whole forward pass, no grid, everything resident in VMEM.
# --------------------------------------------------------------------------
def _rfagnn_fused_kernel(x_ref, adj_ref, p_ref, o_ref):
    f32 = jnp.float32
    n, g_num = N_NODES, NUM_GRAPH

    x = x_ref[...]            # (N, in_dim)
    adj = adj_ref[...]        # (N, N), adj[dst, src]

    # static, aligned slices of the packed parameter slab (single DMA'd input)
    wg = p_ref[_WG:_WG + IN_DIM, 0:GDIM]
    bg = p_ref[_BG:_BG + 1, 0:GDIM]
    wdst = p_ref[_WDST:_WDST + GDIM, 0:NUM_GRAPH]
    bgate = p_ref[_BGATE:_BGATE + 1, 0:NUM_GRAPH]
    wsrc_t = p_ref[_WSRC:_WSRC + NUM_GRAPH, 0:GDIM]
    w1 = p_ref[_W1:_W1 + IN_DIM, 0:HID]
    b1 = p_ref[_B1:_B1 + 1, 0:HID]
    wmod_bd = p_ref[_WMOD:_WMOD + GH, 0:GH]
    bmod = p_ref[_BMOD:_BMOD + 1, 0:GH]
    w2 = p_ref[_W2:_W2 + GH, 0:OUT_DIM]
    b2 = p_ref[_B2:_B2 + 1, 0:OUT_DIM]

    # ---- GraphLearning: node embedding + per-channel edge-gate scores ------
    h = jnp.dot(x, wg, preferred_element_type=f32) + bg                       # (N, Dg)
    s_dst = jnp.dot(h, wdst, preferred_element_type=f32) + bgate              # (N, G)
    s_src_t = jax.lax.dot_general(wsrc_t, h, (((1,), (1,)), ((), ())),
                                  preferred_element_type=f32)                 # (G, N)

    # ---- source-side norm from in-degrees (XLU lane reduction, no MXU) -----
    indeg = jnp.sum(adj, axis=1, keepdims=True)                               # (N, 1)
    norm = jax.lax.rsqrt(jnp.maximum(indeg, 1.0))                             # (N, 1)

    # ---- linear1 + ReLU -----------------------------------------------------
    feat0 = jnp.maximum(jnp.dot(x, w1, preferred_element_type=f32) + b1, 0.0)  # (N, H)

    # ---- per-channel gated adjacency blocks -> block-diagonal (G*N, G*N) ----
    # fac_g[v, u] = adj[v, u] * sigmoid(<h[v], wdst_g> + <h[u], wsrc_g> + b_g)
    zeros_nn = jnp.zeros((n, n), f32)
    fac_rows = []
    for g in range(g_num):                                    # static unroll, G=3
        logit = s_dst[:, g:g + 1] + s_src_t[g:g + 1, :]       # (N, N)
        fac_g = adj * jax.nn.sigmoid(logit)                   # (N, N)
        fac_rows.append(jnp.concatenate(
            [fac_g if c == g else zeros_nn for c in range(g_num)], axis=1))
    fac_bd = jnp.concatenate(fac_rows, axis=0)                # (G*N, G*N)

    # ---- fused hop loop: ONE matmul per hop for all channels ----------------
    feat0_st = jnp.concatenate([feat0] * g_num, axis=0)       # (G*N, H)
    norm_st = jnp.concatenate([norm] * g_num, axis=0)         # (G*N, 1)
    feat = feat0_st
    for _ in range(NUM_HOP):                                  # static unroll
        feat = (1.0 - BETA) * jnp.dot(fac_bd, feat * norm_st,
                                      preferred_element_type=f32) \
               + BETA * feat0_st

    # ---- NodeApplyModule (Linear + LeakyReLU(0.2)), all channels fused ------
    feat_ln = jnp.concatenate(
        [feat[g * n:(g + 1) * n, :] for g in range(g_num)], axis=1)           # (N, G*H)
    hmod = jnp.dot(feat_ln, wmod_bd, preferred_element_type=f32) + bmod       # (N, G*H)
    hmod = jnp.where(hmod > 0, hmod, 0.2 * hmod)

    # ---- readout: mean over nodes -> tanh -> linear2 ------------------------
    h3 = jnp.tanh(jnp.mean(hmod, axis=0, keepdims=True))                      # (1, G*H)
    o_ref[...] = jnp.dot(h3, w2, preferred_element_type=f32) + b2             # (1, out)


@jax.jit
def rfagnn_forward(x, adj, param_slab):
    return pl.pallas_call(
        _rfagnn_fused_kernel,
        out_shape=jax.ShapeDtypeStruct((1, OUT_DIM), jnp.float32),
        in_specs=[pl.BlockSpec(memory_space=pltpu.MemorySpace.VMEM)] * 3,
        out_specs=pl.BlockSpec(memory_space=pltpu.MemorySpace.VMEM),
    )(x, adj, param_slab)


# --------------------------------------------------------------------------
# Host-side parameter packing: one pre-padded f32 slab, block-diag apply_mod.
# --------------------------------------------------------------------------
def pack_params(p):
    slab = np.zeros((SLAB_ROWS, GH), np.float32)

    def put(r, a):
        a = np.asarray(a, np.float32)
        slab[r:r + a.shape[0], :a.shape[1]] = a

    put(_WG, p["wg"])
    put(_BG, p["bg"])
    put(_WDST, p["gate_wdst"])
    put(_BGATE, p["gate_b"])
    put(_WSRC, p["gate_wsrc"])
    put(_W1, p["w1"])
    put(_B1, p["b1"])
    wmod_bd = np.zeros((GH, GH), np.float32)
    for g in range(NUM_GRAPH):
        wmod_bd[g * HID:(g + 1) * HID, g * HID:(g + 1) * HID] = np.asarray(p["wmod"][g])
    put(_WMOD, wmod_bd)
    put(_BMOD, np.concatenate([np.asarray(p["bmod"][g]) for g in range(NUM_GRAPH)],
                              axis=1))
    put(_W2, p["w2"])
    put(_B2, p["b2"])
    return jnp.asarray(slab)


# --------------------------------------------------------------------------
# Pure-JAX reference (mirrors the torch semantics) for the correctness check
# --------------------------------------------------------------------------
def rfagnn_reference(x, adj, p):
    h = x @ p["wg"] + p["bg"]
    s_dst = h @ p["gate_wdst"] + p["gate_b"]          # (N, G)
    s_src = h @ p["gate_wsrc"].T                      # (N, G)
    g_num = p["gate_wsrc"].shape[0]
    factors = adj[None] * jax.nn.sigmoid(
        s_dst.T[:, :, None] + s_src.T[:, None, :])    # (G, N, N)
    h2 = jnp.maximum(x @ p["w1"] + p["b1"], 0.0)
    norm = (jnp.maximum(adj.sum(axis=1), 1.0) ** -0.5)[:, None]
    outs = []
    for g in range(g_num):
        feat0 = h2
        feat = h2
        for _ in range(NUM_HOP):
            feat = factors[g] @ (feat * norm)
            feat = feat * (1.0 - BETA) + feat0 * BETA
        hmod = feat @ p["wmod"][g] + p["bmod"][g]
        outs.append(jnp.where(hmod > 0, hmod, 0.2 * hmod))
    h2 = jnp.concatenate(outs, axis=-1)
    h3 = jnp.tanh(jnp.mean(h2, axis=0, keepdims=True))
    return h3 @ p["w2"] + p["b2"]


# --------------------------------------------------------------------------
def make_params(key):
    ks = jax.random.split(key, 10)

    def init(k, shape):
        return (0.1 * jax.random.normal(k, shape)).astype(jnp.float32)

    return dict(
        wg=init(ks[0], (IN_DIM, GDIM)), bg=init(ks[1], (1, GDIM)),
        gate_wdst=init(ks[2], (GDIM, NUM_GRAPH)),   # dst half of Linear(2*gd, 1) per channel
        gate_wsrc=init(ks[3], (NUM_GRAPH, GDIM)),   # src half
        gate_b=init(ks[4], (1, NUM_GRAPH)),
        w1=init(ks[5], (IN_DIM, HID)), b1=init(ks[6], (1, HID)),
        wmod=init(ks[7], (NUM_GRAPH, HID, HID)),
        bmod=init(ks[8], (NUM_GRAPH, 1, HID)),
        w2=init(ks[9], (HID * NUM_GRAPH, OUT_DIM)),
        b2=jnp.zeros((1, OUT_DIM), jnp.float32),
    )


if __name__ == "__main__":
    key = jax.random.PRNGKey(0)
    k_adj, k_x, k_p = jax.random.split(key, 3)

    # deterministic small graph: N nodes, dense 0/1 adjacency adj[dst, src]
    adj = (jax.random.uniform(k_adj, (N_NODES, N_NODES)) < 0.3).astype(jnp.float32)
    adj = jnp.maximum(adj, jnp.eye(N_NODES, dtype=jnp.float32))   # self-loops
    x = jax.random.normal(k_x, (N_NODES, IN_DIM), dtype=jnp.float32)

    params = make_params(k_p)
    slab = pack_params(params)           # packed once on the host (weight layout)

    out = jax.block_until_ready(rfagnn_forward(x, adj, slab))
    ref = jax.block_until_ready(rfagnn_reference(x, adj, params))

    # DEFAULT-precision matmuls run a single bf16 MXU pass (f32 accumulation), so
    # the tolerance is widened from 1e-3 to cover bf16 operand rounding.
    np.testing.assert_allclose(np.asarray(out), np.asarray(ref), rtol=1e-2, atol=3e-3)

    # TODO(synk): zinc / citation branches (embedding, BatchNorm, per-hop gates with
    # model_mode=1, log_softmax head), training-mode dropout and the disentangle
    # loss are not on this syn-relation eval forward path and are not implemented.
    print("KERNEL_OK")
</pallas_src>

<mosaic_0001>
module attributes {stable_mosaic.version = 11 : i64} {
  func.func @_rfagnn_fused_kernel(%arg0: memref<16x8xf32, #tpu.memory_space<vmem>>, %arg1: memref<16x16xf32, #tpu.memory_space<vmem>>, %arg2: memref<176x48xf32, #tpu.memory_space<vmem>>, %arg3: memref<1x4xf32, #tpu.memory_space<vmem>>) attributes {dimension_semantics = [], scalar_prefetch = 0 : i64, scratch_operands = 0 : i64, tpu.core_type = #tpu.core_type<tc>} {
    %c0 = arith.constant 0 : index
    %c0_0 = arith.constant 0 : index
    %0 = vector.load %arg0[%c0, %c0_0] : memref<16x8xf32, #tpu.memory_space<vmem>>, vector<16x8xf32>
    %c0_1 = arith.constant 0 : index
    %c0_2 = arith.constant 0 : index
    %1 = vector.load %arg1[%c0_1, %c0_2] : memref<16x16xf32, #tpu.memory_space<vmem>>, vector<16x16xf32>
    %c0_3 = arith.constant 0 : index
    %c0_4 = arith.constant 0 : index
    %2 = vector.load %arg2[%c0_3, %c0_4] : memref<176x48xf32, #tpu.memory_space<vmem>>, vector<8x16xf32>
    %c8 = arith.constant 8 : index
    %c0_5 = arith.constant 0 : index
    %3 = vector.load %arg2[%c8, %c0_5] : memref<176x48xf32, #tpu.memory_space<vmem>>, vector<1x16xf32>
    %c16 = arith.constant 16 : index
    %c0_6 = arith.constant 0 : index
    %4 = vector.load %arg2[%c16, %c0_6] : memref<176x48xf32, #tpu.memory_space<vmem>>, vector<16x3xf32>
    %c32 = arith.constant 32 : index
    %c0_7 = arith.constant 0 : index
    %5 = vector.load %arg2[%c32, %c0_7] : memref<176x48xf32, #tpu.memory_space<vmem>>, vector<1x3xf32>
    %c40 = arith.constant 40 : index
    %c0_8 = arith.constant 0 : index
    %6 = vector.load %arg2[%c40, %c0_8] : memref<176x48xf32, #tpu.memory_space<vmem>>, vector<3x16xf32>
    %c48 = arith.constant 48 : index
    %c0_9 = arith.constant 0 : index
    %7 = vector.load %arg2[%c48, %c0_9] : memref<176x48xf32, #tpu.memory_space<vmem>>, vector<8x16xf32>
    %c56 = arith.constant 56 : index
    %c0_10 = arith.constant 0 : index
    %8 = vector.load %arg2[%c56, %c0_10] : memref<176x48xf32, #tpu.memory_space<vmem>>, vector<1x16xf32>
    %c64 = arith.constant 64 : index
    %c0_11 = arith.constant 0 : index
    %9 = vector.load %arg2[%c64, %c0_11] : memref<176x48xf32, #tpu.memory_space<vmem>>, vector<48x48xf32>
    %c112 = arith.constant 112 : index
    %c0_12 = arith.constant 0 : index
    %10 = vector.load %arg2[%c112, %c0_12] : memref<176x48xf32, #tpu.memory_space<vmem>>, vector<1x48xf32>
    %c120 = arith.constant 120 : index
    %c0_13 = arith.constant 0 : index
    %11 = vector.load %arg2[%c120, %c0_13] : memref<176x48xf32, #tpu.memory_space<vmem>>, vector<48x4xf32>
    %c168 = arith.constant 168 : index
    %c0_14 = arith.constant 0 : index
    %12 = vector.load %arg2[%c168, %c0_14] : memref<176x48xf32, #tpu.memory_space<vmem>>, vector<1x4xf32>
    %cst = arith.constant dense<0.000000e+00> : vector<16x16xf32>
    %13 = tpu.matmul %0, %2, %cst {dimension_numbers = #tpu.dot_dimension_numbers<[1], [0], [0], [1], [0, 0, 1, 1], [], []>} : vector<16x8xf32>, vector<8x16xf32>, vector<16x16xf32> -> vector<16x16xf32>
    %14 = vector.broadcast %3 : vector<1x16xf32> to vector<16x16xf32>
    %15 = arith.addf %13, %14 : vector<16x16xf32>
    %cst_15 = arith.constant dense<0.000000e+00> : vector<16x3xf32>
    %16 = tpu.matmul %15, %4, %cst_15 {dimension_numbers = #tpu.dot_dimension_numbers<[1], [0], [0], [1], [0, 0, 1, 1], [], []>} : vector<16x16xf32>, vector<16x3xf32>, vector<16x3xf32> -> vector<16x3xf32>
    %17 = vector.broadcast %5 : vector<1x3xf32> to vector<16x3xf32>
    %18 = arith.addf %16, %17 : vector<16x3xf32>
    %cst_16 = arith.constant dense<0.000000e+00> : vector<3x16xf32>
    %19 = tpu.matmul %6, %15, %cst_16 {dimension_numbers = #tpu.dot_dimension_numbers<[1], [1], [0], [0], [0, 0, 1, 0], [], []>} : vector<3x16xf32>, vector<16x16xf32>, vector<3x16xf32> -> vector<3x16xf32>
    %cst_17 = arith.constant dense<0.000000e+00> : vector<16xf32>
    %20 = vector.multi_reduction <add>, %1, %cst_17 [1] : vector<16x16xf32> to vector<16xf32>
    %21 = vector.shape_cast %20 : vector<16xf32> to vector<16x1xf32>
    %cst_18 = arith.constant 1.000000e+00 : f32
    %22 = vector.broadcast %cst_18 : f32 to vector<16x1xf32>
    %23 = arith.maximumf %21, %22 : vector<16x1xf32>
    %24 = math.rsqrt %23 : vector<16x1xf32>
    %cst_19 = arith.constant dense<0.000000e+00> : vector<16x16xf32>
    %25 = tpu.matmul %0, %7, %cst_19 {dimension_numbers = #tpu.dot_dimension_numbers<[1], [0], [0], [1], [0, 0, 1, 1], [], []>} : vector<16x8xf32>, vector<8x16xf32>, vector<16x16xf32> -> vector<16x16xf32>
    %26 = vector.broadcast %8 : vector<1x16xf32> to vector<16x16xf32>
    %27 = arith.addf %25, %26 : vector<16x16xf32>
    %cst_20 = arith.constant 0.000000e+00 : f32
    %28 = vector.broadcast %cst_20 : f32 to vector<16x16xf32>
    %29 = arith.maximumf %27, %28 : vector<16x16xf32>
    %cst_21 = arith.constant 0.000000e+00 : f32
    %30 = vector.broadcast %cst_21 : f32 to vector<16x16xf32>
    %31 = vector.extract_strided_slice %18 {offsets = [0, 0], sizes = [16, 1], strides = [1, 1]} : vector<16x3xf32> to vector<16x1xf32>
    %32 = vector.extract_strided_slice %19 {offsets = [0, 0], sizes = [1, 16], strides = [1, 1]} : vector<3x16xf32> to vector<1x16xf32>
    %33 = vector.broadcast %31 : vector<16x1xf32> to vector<16x16xf32>
    %34 = vector.broadcast %32 : vector<1x16xf32> to vector<16x16xf32>
    %35 = arith.addf %33, %34 : vector<16x16xf32>
    %36 = arith.negf %35 : vector<16x16xf32>
    %37 = math.exp %36 : vector<16x16xf32>
    %cst_22 = arith.constant 1.000000e+00 : f32
    %38 = vector.broadcast %cst_22 : f32 to vector<16x16xf32>
    %39 = arith.addf %38, %37 : vector<16x16xf32>
    %40 = arith.divf %38, %39 : vector<16x16xf32>
    %41 = arith.mulf %1, %40 : vector<16x16xf32>
    %42 = tpu.concatenate %41, %30, %30 in 1 : vector<16x16xf32>, vector<16x16xf32>, vector<16x16xf32> -> vector<16x48xf32>
    %43 = vector.extract_strided_slice %18 {offsets = [0, 1], sizes = [16, 1], strides = [1, 1]} : vector<16x3xf32> to vector<16x1xf32>
    %44 = vector.extract_strided_slice %19 {offsets = [1, 0], sizes = [1, 16], strides = [1, 1]} : vector<3x16xf32> to vector<1x16xf32>
    %45 = vector.broadcast %43 : vector<16x1xf32> to vector<16x16xf32>
    %46 = vector.broadcast %44 : vector<1x16xf32> to vector<16x16xf32>
    %47 = arith.addf %45, %46 : vector<16x16xf32>
    %48 = arith.negf %47 : vector<16x16xf32>
    %49 = math.exp %48 : vector<16x16xf32>
    %cst_23 = arith.constant 1.000000e+00 : f32
    %50 = vector.broadcast %cst_23 : f32 to vector<16x16xf32>
    %51 = arith.addf %50, %49 : vector<16x16xf32>
    %52 = arith.divf %50, %51 : vector<16x16xf32>
    %53 = arith.mulf %1, %52 : vector<16x16xf32>
    %54 = tpu.concatenate %30, %53, %30 in 1 : vector<16x16xf32>, vector<16x16xf32>, vector<16x16xf32> -> vector<16x48xf32>
    %55 = vector.extract_strided_slice %18 {offsets = [0, 2], sizes = [16, 1], strides = [1, 1]} : vector<16x3xf32> to vector<16x1xf32>
    %56 = vector.extract_strided_slice %19 {offsets = [2, 0], sizes = [1, 16], strides = [1, 1]} : vector<3x16xf32> to vector<1x16xf32>
    %57 = vector.broadcast %55 : vector<16x1xf32> to vector<16x16xf32>
    %58 = vector.broadcast %56 : vector<1x16xf32> to vector<16x16xf32>
    %59 = arith.addf %57, %58 : vector<16x16xf32>
    %60 = arith.negf %59 : vector<16x16xf32>
    %61 = math.exp %60 : vector<16x16xf32>
    %cst_24 = arith.constant 1.000000e+00 : f32
    %62 = vector.broadcast %cst_24 : f32 to vector<16x16xf32>
    %63 = arith.addf %62, %61 : vector<16x16xf32>
    %64 = arith.divf %62, %63 : vector<16x16xf32>
    %65 = arith.mulf %1, %64 : vector<16x16xf32>
    %66 = tpu.concatenate %30, %30, %65 in 1 : vector<16x16xf32>, vector<16x16xf32>, vector<16x16xf32> -> vector<16x48xf32>
    %67 = tpu.concatenate %42, %54, %66 in 0 : vector<16x48xf32>, vector<16x48xf32>, vector<16x48xf32> -> vector<48x48xf32>
    %68 = tpu.concatenate %29, %29, %29 in 0 : vector<16x16xf32>, vector<16x16xf32>, vector<16x16xf32> -> vector<48x16xf32>
    %69 = tpu.concatenate %24, %24, %24 in 0 : vector<16x1xf32>, vector<16x1xf32>, vector<16x1xf32> -> vector<48x1xf32>
    %70 = vector.broadcast %69 : vector<48x1xf32> to vector<48x16xf32>
    %71 = arith.mulf %68, %70 : vector<48x16xf32>
    %cst_25 = arith.constant dense<0.000000e+00> : vector<48x16xf32>
    %72 = tpu.matmul %67, %71, %cst_25 {dimension_numbers = #tpu.dot_dimension_numbers<[1], [0], [0], [1], [0, 0, 1, 1], [], []>} : vector<48x48xf32>, vector<48x16xf32>, vector<48x16xf32> -> vector<48x16xf32>
    %cst_26 = arith.constant 0.699999988 : f32
    %73 = vector.broadcast %cst_26 : f32 to vector<48x16xf32>
    %74 = arith.mulf %73, %72 : vector<48x16xf32>
    %cst_27 = arith.constant 3.000000e-01 : f32
    %75 = vector.broadcast %cst_27 : f32 to vector<48x16xf32>
    %76 = arith.mulf %75, %68 : vector<48x16xf32>
    %77 = arith.addf %74, %76 : vector<48x16xf32>
    %78 = vector.broadcast %69 : vector<48x1xf32> to vector<48x16xf32>
    %79 = arith.mulf %77, %78 : vector<48x16xf32>
    %cst_28 = arith.constant dense<0.000000e+00> : vector<48x16xf32>
    %80 = tpu.matmul %67, %79, %cst_28 {dimension_numbers = #tpu.dot_dimension_numbers<[1], [0], [0], [1], [0, 0, 1, 1], [], []>} : vector<48x48xf32>, vector<48x16xf32>, vector<48x16xf32> -> vector<48x16xf32>
    %cst_29 = arith.constant 0.699999988 : f32
    %81 = vector.broadcast %cst_29 : f32 to vector<48x16xf32>
    %82 = arith.mulf %81, %80 : vector<48x16xf32>
    %cst_30 = arith.constant 3.000000e-01 : f32
    %83 = vector.broadcast %cst_30 : f32 to vector<48x16xf32>
    %84 = arith.mulf %83, %68 : vector<48x16xf32>
    %85 = arith.addf %82, %84 : vector<48x16xf32>
    %86 = vector.extract_strided_slice %85 {offsets = [0, 0], sizes = [16, 16], strides = [1, 1]} : vector<48x16xf32> to vector<16x16xf32>
    %87 = vector.extract_strided_slice %85 {offsets = [16, 0], sizes = [16, 16], strides = [1, 1]} : vector<48x16xf32> to vector<16x16xf32>
    %88 = vector.extract_strided_slice %85 {offsets = [32, 0], sizes = [16, 16], strides = [1, 1]} : vector<48x16xf32> to vector<16x16xf32>
    %89 = tpu.concatenate %86, %87, %88 in 1 : vector<16x16xf32>, vector<16x16xf32>, vector<16x16xf32> -> vector<16x48xf32>
    %cst_31 = arith.constant dense<0.000000e+00> : vector<16x48xf32>
    %90 = tpu.matmul %89, %9, %cst_31 {dimension_numbers = #tpu.dot_dimension_numbers<[1], [0], [0], [1], [0, 0, 1, 1], [], []>} : vector<16x48xf32>, vector<48x48xf32>, vector<16x48xf32> -> vector<16x48xf32>
    %91 = vector.broadcast %10 : vector<1x48xf32> to vector<16x48xf32>
    %92 = arith.addf %90, %91 : vector<16x48xf32>
    %cst_32 = arith.constant 0.000000e+00 : f32
    %93 = vector.broadcast %cst_32 : f32 to vector<16x48xf32>
    %94 = arith.cmpf ogt, %92, %93 : vector<16x48xf32>
    %cst_33 = arith.constant 2.000000e-01 : f32
    %95 = vector.broadcast %cst_33 : f32 to vector<16x48xf32>
    %96 = arith.mulf %95, %92 : vector<16x48xf32>
    %97 = arith.select %94, %92, %96 : vector<16x48xi1>, vector<16x48xf32>
    %cst_34 = arith.constant dense<0.000000e+00> : vector<48xf32>
    %98 = vector.multi_reduction <add>, %97, %cst_34 [0] : vector<16x48xf32> to vector<48xf32>
    %99 = vector.shape_cast %98 : vector<48xf32> to vector<1x48xf32>
    %cst_35 = arith.constant 1.600000e+01 : f32
    %100 = vector.broadcast %cst_35 : f32 to vector<1x48xf32>
    %101 = arith.divf %99, %100 : vector<1x48xf32>
    %102 = math.tanh %101 : vector<1x48xf32>
    %cst_36 = arith.constant dense<0.000000e+00> : vector<1x4xf32>
    %103 = tpu.matmul %102, %11, %cst_36 {dimension_numbers = #tpu.dot_dimension_numbers<[1], [0], [0], [1], [0, 0, 1, 1], [], []>} : vector<1x48xf32>, vector<48x4xf32>, vector<1x4xf32> -> vector<1x4xf32>
    %104 = arith.addf %103, %12 : vector<1x4xf32>
    %c0_37 = arith.constant 0 : index
    %c0_38 = arith.constant 0 : index
    %105 = vector.load %arg3[%c0_37, %c0_38] : memref<1x4xf32, #tpu.memory_space<vmem>>, vector<1x4xf32>
    tpu.vector_store %arg3[%c0_37, %c0_38], %104 {strides = array<i32>} : memref<1x4xf32, #tpu.memory_space<vmem>>, vector<1x4xf32>,
    return
  }
}

</mosaic_0001>

<bundles_post_ra>
// kernel: rfagnn_forward.1
= control target key start
LH: loop header
LB: loop body
LE: loop exit
PB: predicated region body
PF: predicated region fallthrough
CT: control target
= control target key end

     0   :  { %vm45_vm0 = vcmask 64512   ;;  %s1489_s0 = inlined_call_operand.vmem [shape: f32[16,8], index: 0, kind: input, shape index: {}]   ;;  %s1490_s1 = inlined_call_operand.vmem [shape: f32[16,16], index: 1, kind: input, shape index: {}]   ;;  %s1491_s2 = inlined_call_operand.vmem [shape: f32[176,48], index: 2, kind: input, shape index: {}]   ;;  %s1492_s3 = inlined_call_operand.hbm [shape: f32[1,4], index: 3, kind: output, shape index: {}]  }
   0x1   :  { %v19_v0 = vld [vmem:[%s1491_s2] sm:$0xff]  ;;  %v16_v2 = vld [vmem:[%s1489_s0 + $0x8] sm:$0xff] }
   0x2   :  { %v15_v1 = vld [vmem:[%s1489_s0] sm:$0xff]  ;;  %1041 = vmatprep.subr.mxu0 %v19_v0 }
   0x3   :  { %1043 = vmatprep.mubr.msk.f32.mxu0 %vm45_vm0, %v15_v1 }
   0x4   :  { %8 = vsyncpa [#allocation3], 0  ;;  %1042 = vmatpush3.msra.mxu0 %v19_v0  ;;  %v21_v3 = vld [vmem:[%s1491_s2 + $0x10] sm:$0xff]  ;;  %v22_v4 = vld [vmem:[%s1491_s2 + $0x18] sm:$0xff]  ;;  %v1258_v6 = vmov 0.0|0.0   ;;  %vm131_vm1 = vcmask 130048   ;;  %v387_v38 = vlaneseq }
   0x5   :  { %1044 = vmatmul.mubr.msk.f32.vlgmr.msra.gmra.mrb[0].mxu0 %vm45_vm0, %v16_v2  ;;  %v1137_v5 = vpack.c.bf16 %v22_v4, %v21_v3  ;;  %1141 = vmatprep.subr.bf16.mxu0 %v1258_v6  ;;  %v1308_v7 = vld [vmem:[%s1490_s1] sm:$0xff]  ;;  %v1313_v8 = vld [vmem:[%s1490_s1 + $0x8] sm:$0xff]  ;;  %vm1259_vm2 = vmmov 0   ;;  %v1260_v10 = vmov 0.0   ;;  %v25_v12 = vld [vmem:[%s1491_s2 + $0x30] sm:$0xff]  ;;  %v1261_v20 = vmov 2  }
   0x6   :  { %v286_v9 = vsel %vm131_vm1, %v1308_v7, 0.0  ;;  %1057 = vmatprep.mubr.msk.f32.mxu0 %vm1259_vm2, %v1260_v10  ;;  %v289_v11 = vsel %vm131_vm1, %v1313_v8, 0.0  ;;  %v955_v13 = vld [vmem:[%s1491_s2 + $0x8] ss:$0 sm:$0xff]  ;;  %vm1143_vm3 = vmpackc.low %vm131_vm1, %vm131_vm1  ;;  %1200 = vset.pattern.permute.xlu0 %v1261_v20  ;;  %v1262_v21 = vmov 1   ;;  %v1263_v29 = vmov 0  }
   0x7   :  { %1138 = vmatprep.subr.bf16.mxu1 %v1137_v5  ;;  %287 = vadd.xlane.f32.xlu0 %v286_v9  ;;  %v24_v19 = vld [vmem:[%s1491_s2 + $0x28] sm:$0x7]  ;;  %v958_v22 = vld [vmem:[%s1491_s2 + $0x20] ss:$0 sm:$0xff]  ;;  %v388_v39 = vshrl.u32 %v387_v38, 7  ;;  %s1264_s7 = smov 16  }
   0x8   :  { %1140 = vmatpush3.bf16.msra.mxu1 %v1137_v5  ;;  %1199 = vset.pattern.permute.xlu1 %v1262_v21  ;;  %v964_v59 = vld [vmem:[%s1491_s2 + $0x38] ss:$0 sm:$0xff]  ;;  %s1265_s8 = smov 32   ;;  %vm409_vm4 = vcmask 261120   ;;  %vm502_vm5 = vcmask 392192   ;;  %vm939_vm8 = vcmask 24576  }
   0x9   :  { %1060 = vmatprep.subr.mxu1 %v25_v12  ;;  %v422_v40 = vsub.s32 1, %v388_v39  ;;  %v462_v41 = vsub.s32 2, %v388_v39  ;;  %v389_v54 = vsub.s32 0, %v388_v39 }
   0xb   :  { %290 = vadd.xlane.f32.xlu0 %v289_v11 }
  0x94   :  { %v288_v26 = vpop.xlane.xlu0 %287 }
  0x95   :  { %v292_v30 = vmax.f32 %v288_v26, 1.0 }
  0x97   :  { %1204 = vrsqrt.f32 %v292_v30 }
  0x98   :  { %v291_v32 = vpop.xlane.xlu0 %290 }
  0x99   :  { %v293_v33 = vmax.f32 %v291_v32, 1.0 }
  0x9b   :  { %1206 = vrsqrt.f32 %v293_v33 }
  0xa1   :  { %v1205_v34 = vpop.eup %1204 }
  0xa5   :  { %v1207_v35 = vpop.eup %1206 }
  0xd8   :  { %v1045_v14 = vpop.f32.mrb[0].mxu0 }
  0xd9   :  { %v124_v15 = vadd.f32 %v1045_v14, %v955_v13  ;;  %v118_v16 = vpop.f32.mrb[1].mxu0 }
  0xda   :  { %v119_v17 = vadd.f32 %v955_v13, %v118_v16 }
  0xdc   :  { %v1142_v18 = vpack.c.bf16 %v124_v15, %v119_v17  ;;  %1050 = vmatprep.mubr.msk.f32.mxu1 %vm131_vm1, %v119_v17 }
  0xdd   :  { %1051 = vmatmul.mubr.msk.f32.vlgmr.msra.gmra.mrb[0].mxu1 %vm131_vm1, %v124_v15 }
  0xde   :  { %1144 = vmatpush3.bf16.xpose.msk.msra.mxu0 %vm1143_vm3, %v1142_v18  ;;  %1061 = vmatpush3.msra.mxu1 %v25_v12 }
  0xdf   :  { %1062 = vmatprep.mubr.msk.f32.mxu1 %vm45_vm0, %v15_v1 }
  0xe1   :  { %1063 = vmatmul.mubr.msk.f32.vlgmr.msra.gmra.mrb[2].mxu1 %vm45_vm0, %v16_v2 }
  0xe5   :  { %1058 = vmatmul.mubr.msk.f32.vlgmr.msra.gmra.mrb[2].mxu0 %vm131_vm1, %v24_v19 }
 0x1b0   :  { %v1052_v23 = vpop.f32.mrb[0].mxu1 }
 0x1b1   :  { %v204_v24 = vpop.f32.mrb[1].mxu1  ;;  %v210_v27 = vadd.f32 %v1052_v23, %v958_v22 }
 0x1b2   :  { %v205_v25 = vadd.f32 %v958_v22, %v204_v24 }
 0x1b4   :  { %453 = vperm.xlu0 %1200, %v205_v25   ;;  %413 = vperm.xlu1 %1199, %v205_v25   ;;  %v1064_v36 = vpop.f32.mrb[2].mxu1 }
 0x1b5   :  { %v366_v37 = vpop.f32.mrb[3].mxu1  ;;  %v1345_v3 = vadd.f32 %v1064_v36, %v964_v59 }
 0x1b6   :  { %v1343_v63 = vadd.f32 %v964_v59, %v366_v37 }
 0x1b7   :  { %v376_v14 = vmax.f32 %v1345_v3, 0.0 }
 0x1b8   :  { %417 = vperm.xlu1 %1199, %v210_v27   ;;  %v282_v28 = vpop.f32.mrb[2].mxu0  ;;  %1203 = vset.pattern.permute.xlu0 %v1263_v29  ;;  %v375_v12 = vmax.f32 %v1343_v63, 0.0 }
 0x1b9   :  { %v1059_v31 = vpop.f32.mrb[3].mxu0  ;;  %v423_v42 = vrot.slane %v282_v28, %v422_v40  ;;  %v463_v43 = vrot.slane %v282_v28, %v462_v41  ;;  %v390_v57 = vrot.slane %v282_v28, %v389_v54 }
 0x1ba   :  { %v1392_v54 = vmul.f32 0.3, %v375_v12 }
 0x1bc   :  { %1201 = vset.pattern.permute.xlu1 %v1261_v20 }
 0x1bd   :  { %457 = vperm.xlu1 %1201, %v210_v27  }
 0x1c1   :  { %1202 = vset.pattern.permute.xlu1 %v1263_v29 }
 0x1c2   :  { %379 = vperm.xlu1 %1202, %v205_v25  }
 0x1c6   :  { %384 = vperm.xlu1 %1202, %v210_v27  }
 0x1ca   :  { %492 = vperm.xlu1 %1202, %v1205_v34  }
 0x1ce   :  { %497 = vperm.xlu1 %1202, %v1207_v35  }
 0x233   :  { %v454_v44 = vpop.permute.xlu0 %453  ;;  %v414_v45 = vpop.permute.xlu1 %413 }
 0x234   :  { %v424_v46 = vadd.f32 %v423_v42, %v414_v45  ;;  %v464_v47 = vadd.f32 %v463_v43, %v454_v44 }
 0x236   :  { %v969_v48 = vmul.f32 -1.442695, %v424_v46  ;;  %v971_v51 = vmul.f32 -1.442695, %v464_v47 }
 0x237   :  { %v418_v49 = vpop.permute.xlu1 %417 }
 0x238   :  { %v425_v50 = vadd.f32 %v423_v42, %v418_v49  ;;  %1208 = vpow2.f32 %v969_v48 }
 0x23a   :  { %v970_v52 = vmul.f32 -1.442695, %v425_v50 }
 0x23c   :  { %1210 = vpow2.f32 %v970_v52  ;;  %v458_v53 = vpop.permute.xlu1 %457 }
 0x23d   :  { %v465_v55 = vadd.f32 %v463_v43, %v458_v53  ;;  %1212 = vpow2.f32 %v971_v51  ;;  %v1388_v51 = vmul.f32 0.3, %v376_v14 }
 0x23f   :  { %v972_v56 = vmul.f32 -1.442695, %v465_v55 }
 0x241   :  { %v380_v58 = vpop.permute.xlu1 %379  ;;  %1214 = vpow2.f32 %v972_v56 }
 0x242   :  { %v391_v60 = vadd.f32 %v390_v57, %v380_v58  ;;  %v1209_v61 = vpop.eup %1208 }
 0x243   :  { %v432_v4 = vadd.f32 1.0, %v1209_v61 }
 0x244   :  { %v967_v62 = vmul.f32 -1.442695, %v391_v60 }
 0x245   :  { %v385_v0 = vpop.permute.xlu1 %384 }
 0x246   :  { %v1211_v1 = vpop.eup %1210  ;;  %v392_v2 = vadd.f32 %v390_v57, %v385_v0  ;;  %1216 = vpow2.f32 %v967_v62 }
 0x247   :  { %v433_v5 = vadd.f32 1.0, %v1211_v1  ;;  %v1213_v9 = vpop.eup %1212 }
 0x248   :  { %v968_v11 = vmul.f32 -1.442695, %v392_v2  ;;  %v472_v15 = vadd.f32 1.0, %v1213_v9 }
 0x249   :  { %1218 = vrcp.f32 %v433_v5  ;;  %v1348_v13 = vpop.permute.xlu1 %492 }
 0x24a   :  { %1220 = vpow2.f32 %v968_v11  ;;  %v500_v17 = vmul.f32 %v1348_v13, %v375_v12 }
 0x24b   :  { %1222 = vrcp.f32 %v432_v4  ;;  %v1215_v16 = vpop.eup %1214 }
 0x24c   :  { %1224 = vrcp.f32 %v472_v15  ;;  %v473_v20 = vadd.f32 1.0, %v1215_v16 }
 0x24d   :  { %v1354_v18 = vpop.permute.xlu1 %497 }
 0x24e   :  { %v501_v19 = vmul.f32 %v1354_v18, %v376_v14  ;;  %1226 = vrcp.f32 %v473_v20 }
 0x250   :  { %v1145_v21 = vpack.c.bf16 %v501_v19, %v500_v17  ;;  %v1217_v22 = vpop.eup %1216 }
 0x251   :  { %v399_v23 = vadd.f32 1.0, %v1217_v22  ;;  %v29_v22 = vld [vmem:[%s1491_s2 + $0x50] sm:$0xff] }
 0x252   :  { %1146 = vmatprep.subr.bf16.mxu1 %v1145_v21 }
 0x253   :  { %v1219_v24 = vpop.eup %1218  ;;  %1148 = vmatpush3.bf16.msra.mxu1 %v1145_v21  ;;  %1228 = vrcp.f32 %v399_v23  ;;  %v30_v23 = vld [vmem:[%s1491_s2 + $0x58] sm:$0xff] }
 0x254   :  { %v1221_v25 = vpop.eup %1220  ;;  %v439_v26 = vmul.f32 %v1219_v24, %v1313_v8  ;;  %1150 = vmatprep.subr.bf16.mxu1 %v1145_v21  ;;  %v31_v24 = vld [vmem:[%s1491_s2 + $0x60] sm:$0xff] }
 0x255   :  { %v1223_v27 = vpop.eup %1222  ;;  %v400_v28 = vadd.f32 1.0, %v1221_v25  ;;  %v32_v25 = vld [vmem:[%s1491_s2 + $0x68] sm:$0xff] }
 0x256   :  { %444 = vrot.lane.b32.xlu1 %v439_v26, %s1264_s7  ;;  %v438_v29 = vmul.f32 %v1223_v27, %v1308_v7  ;;  %v1225_v30 = vpop.eup %1224  ;;  %v1177_v27 = vpack.c.bf16 %v32_v25, %v31_v24 }
 0x257   :  { %1230 = vrcp.f32 %v400_v28  ;;  %1152 = vmatpush3.bf16.msra.mxu1 %v1145_v21  ;;  %v478_v31 = vmul.f32 %v1225_v30, %v1308_v7 }
 0x258   :  { %1154 = vmatprep.subr.bf16.mxu1 %v1145_v21  ;;  %v1227_v32 = vpop.eup %1226 }
 0x259   :  { %v479_v35 = vmul.f32 %v1227_v32, %v1313_v8 }
 0x25a   :  { %442 = vrot.lane.b32.xlu1 %v438_v29, %s1264_s7 }
 0x25b   :  { %1156 = vmatpush3.bf16.msra.mxu1 %v1145_v21 }
 0x25d   :  { %v1229_v33 = vpop.eup %1228 }
 0x25e   :  { %482 = vrot.lane.b32.xlu1 %v478_v31, %s1265_s8  ;;  %v405_v34 = vmul.f32 %v1229_v33, %v1308_v7 }
 0x260   :  { %v407_v37 = vsel %vm131_vm1, %v405_v34, 0.0 }
 0x261   :  { %v1231_v36 = vpop.eup %1230  ;;  %v410_v38 = vsel %vm409_vm4, %v407_v37, 0.0 }
 0x262   :  { %484 = vrot.lane.b32.xlu1 %v479_v35, %s1265_s8  ;;  %v406_v39 = vmul.f32 %v1231_v36, %v1313_v8  ;;  %1077 = vmatprep.mubr.msk.f32.mxu1 %vm502_vm5, %v410_v38 }
 0x263   :  { %1098 = vmatprep.mubr.msk.f32.mxu0 %vm502_vm5, %v410_v38 }
 0x264   :  { %v408_v40 = vsel %vm131_vm1, %v406_v39, 0.0 }
 0x265   :  { %v411_v7 = vsel %vm409_vm4, %v408_v40, 0.0 }
 0x266   :  { %1078 = vmatmul.mubr.msk.f32.vlgmr.msra.gmra.mrb[4].mxu1 %vm502_vm5, %v411_v7 }
 0x2c8   :  { %v445_v41 = vpop.permute.xlu1 %444 }
 0x2c9   :  { %v449_v42 = vsel %vm131_vm1, 0.0, %v445_v41 }
 0x2ca   :  { %v451_v8 = vsel %vm409_vm4, %v449_v42, 0.0 }
 0x2cc   :  { %v443_v43 = vpop.permute.xlu1 %442 }
 0x2cd   :  { %v448_v44 = vsel %vm131_vm1, 0.0, %v443_v43 }
 0x2ce   :  { %v450_v45 = vsel %vm409_vm4, %v448_v44, 0.0 }
 0x2cf   :  { %1080 = vmatprep.mubr.msk.f32.mxu1 %vm502_vm5, %v450_v45 }
 0x2d0   :  { %1081 = vmatmul.mubr.msk.f32.gmra.mrb[6].mxu1 %vm502_vm5, %v451_v8  ;;  %v483_v46 = vpop.permute.xlu1 %482 }
 0x2d1   :  { %v488_v47 = vsel %vm409_vm4, 0.0, %v483_v46 }
 0x2d2   :  { %1083 = vmatprep.mubr.msk.f32.mxu1 %vm502_vm5, %v488_v47 }
 0x2d4   :  { %v485_v48 = vpop.permute.xlu1 %484 }
 0x2d5   :  { %v489_v49 = vsel %vm409_vm4, 0.0, %v485_v48 }
 0x2d6   :  { %1084 = vmatmul.mubr.msk.f32.gmra.mrb[8].mxu1 %vm502_vm5, %v489_v49 }
 0x339   :  { %v1079_v50 = vpop.f32.mrb[4].mxu1 }
 0x33a   :  { %v617_v52 = vmul.f32 0.7, %v1079_v50  ;;  %v587_v53 = vpop.f32.mrb[5].mxu1 }
 0x33b   :  { %v616_v55 = vmul.f32 0.7, %v587_v53  ;;  %v35_v53 = vld [vmem:[%s1491_s2 + $0x80] sm:$0xff] }
 0x33c   :  { %v625_v56 = vadd.f32 %v1388_v51, %v617_v52  ;;  %v34_v52 = vld [vmem:[%s1491_s2 + $0x78] sm:$0xff] }
 0x33d   :  { %v624_v57 = vadd.f32 %v1392_v54, %v616_v55  ;;  %v37_v55 = vld [vmem:[%s1491_s2 + $0x90] sm:$0xff] }
 0x33e   :  { %v631_v58 = vmul.f32 %v625_v56, %v1354_v18 }
 0x33f   :  { %v630_v59 = vmul.f32 %v624_v57, %v1348_v13  ;;  %v38_v57 = vld [vmem:[%s1491_s2 + $0x98] sm:$0xff] }
 0x341   :  { %v1157_v60 = vpack.c.bf16 %v631_v58, %v630_v59  ;;  %v39_v58 = vld [vmem:[%s1491_s2 + $0xa0] sm:$0xff] }
 0x342   :  { %v1188_v59 = vpack.c.bf16 %v39_v58, %v38_v57 }
 0x343   :  { %1158 = vmatprep.subr.bf16.mxu0 %v1157_v60 }
 0x344   :  { %1160 = vmatpush3.bf16.msra.mxu0 %v1157_v60  ;;  %v985_v60 = vld [vmem:[%s1491_s2 + $0x70] ss:$0 sm:$0xff] }
 0x3a3   :  { %v1082_v61 = vpop.f32.mrb[6].mxu1 }
 0x3a4   :  { %v619_v62 = vmul.f32 0.7, %v1082_v61  ;;  %v597_v0 = vpop.f32.mrb[7].mxu1 }
 0x3a5   :  { %v618_v1 = vmul.f32 0.7, %v597_v0 }
 0x3a6   :  { %v627_v63 = vadd.f32 %v1388_v51, %v619_v62 }
 0x3a7   :  { %v626_v2 = vadd.f32 %v1392_v54, %v618_v1 }
 0x3a8   :  { %v633_v3 = vmul.f32 %v627_v63, %v1354_v18 }
 0x3a9   :  { %v632_v4 = vmul.f32 %v626_v2, %v1348_v13  ;;  %v1085_v5 = vpop.f32.mrb[8].mxu1 }
 0x3aa   :  { %v621_v9 = vmul.f32 0.7, %v1085_v5  ;;  %v607_v11 = vpop.f32.mrb[9].mxu1 }
 0x3ab   :  { %v620_v12 = vmul.f32 0.7, %v607_v11  ;;  %v1161_v14 = vpack.c.bf16 %v633_v3, %v632_v4 }
 0x3ac   :  { %v629_v15 = vadd.f32 %v1388_v51, %v621_v9 }
 0x3ad   :  { %v628_v16 = vadd.f32 %v1392_v54, %v620_v12  ;;  %1162 = vmatprep.subr.bf16.mxu0 %v1161_v14 }
 0x3ae   :  { %v635_v17 = vmul.f32 %v629_v15, %v1354_v18  ;;  %1164 = vmatpush3.bf16.msra.mxu0 %v1161_v14  ;;  %v28_v18 = vld [vmem:[%s1491_s2 + $0x48] sm:$0xff] }
 0x3af   :  { %v634_v19 = vmul.f32 %v628_v16, %v1348_v13  ;;  %v27_v13 = vld [vmem:[%s1491_s2 + $0x40] sm:$0xff] }
 0x3b0   :  { %v1169_v21 = vpack.c.bf16 %v28_v18, %v27_v13  ;;  %v40_v13 = vld [vmem:[%s1491_s2 + $0xa8] sm:$0x1] }
 0x3b1   :  { %v1165_v20 = vpack.c.bf16 %v635_v17, %v634_v19 }
 0x3b2   :  { %1170 = vmatprep.subr.bf16.mxu1 %v1169_v21 }
 0x3b3   :  { %1166 = vmatprep.subr.bf16.mxu0 %v1165_v20  ;;  %1172 = vmatpush3.bf16.msra.mxu1 %v1169_v21 }
 0x3b4   :  { %1168 = vmatpush3.bf16.msra.mxu0 %v1165_v20 }
 0x3b5   :  { %1181 = vmatprep.subr.bf16.mxu0 %v1258_v6 }
 0x3b7   :  { %1099 = vmatmul.mubr.msk.f32.vlgmr.msra.gmra.mrb[4].mxu0 %vm502_vm5, %v411_v7 }
 0x3b8   :  { %1101 = vmatprep.mubr.msk.f32.mxu0 %vm502_vm5, %v450_v45 }
 0x3bb   :  { %1102 = vmatmul.mubr.msk.f32.gmra.mrb[6].mxu0 %vm502_vm5, %v451_v8 }
 0x3bc   :  { %1104 = vmatprep.mubr.msk.f32.mxu0 %vm502_vm5, %v488_v47 }
 0x3bf   :  { %1105 = vmatmul.mubr.msk.f32.gmra.mrb[8].mxu0 %vm502_vm5, %v489_v49 }
 0x3c0   :  { %1134 = vmatprep.mubr.msk.f32.mxu0 %vm1259_vm2, %v1260_v10  ;;  %v1173_v10 = vpack.c.bf16 %v30_v23, %v29_v22 }
 0x3c2   :  { %1174 = vmatprep.subr.bf16.mxu1 %v1173_v10 }
 0x3c3   :  { %1176 = vmatpush3.bf16.msra.mxu1 %v1173_v10 }
 0x3c4   :  { %1178 = vmatprep.subr.bf16.mxu1 %v1177_v27 }
 0x3c7   :  { %1180 = vmatpush3.bf16.msra.mxu1 %v1177_v27 }
 0x48a   :  { %v1100_v26 = vpop.f32.mrb[4].mxu0 }
 0x48b   :  { %v702_v28 = vpop.f32.mrb[5].mxu0  ;;  %v732_v42 = vmul.f32 0.7, %v1100_v26 }
 0x48c   :  { %v731_v7 = vmul.f32 0.7, %v702_v28 }
 0x48d   :  { %v738_v46 = vadd.f32 %v732_v42, %v1388_v51 }
 0x48e   :  { %v1103_v29 = vpop.f32.mrb[6].mxu0  ;;  %v737_v43 = vadd.f32 %v731_v7, %v1392_v54 }
 0x48f   :  { %v734_v30 = vmul.f32 0.7, %v1103_v29  ;;  %v712_v31 = vpop.f32.mrb[7].mxu0 }
 0x490   :  { %v733_v33 = vmul.f32 0.7, %v712_v31 }
 0x491   :  { %v740_v32 = vadd.f32 %v734_v30, %v1388_v51 }
 0x492   :  { %v1106_v34 = vpop.f32.mrb[8].mxu0  ;;  %v739_v37 = vadd.f32 %v733_v33, %v1392_v54 }
 0x493   :  { %747 = vrot.lane.b32.xlu1 %v740_v32, %s1264_s7  ;;  %v722_v35 = vpop.f32.mrb[9].mxu0  ;;  %v736_v38 = vmul.f32 0.7, %v1106_v34 }
 0x494   :  { %v735_v36 = vmul.f32 0.7, %v722_v35 }
 0x495   :  { %v742_v40 = vadd.f32 %v736_v38, %v1388_v51  ;;  %v1182_v51 = vpack.c.bf16 %v35_v53, %v34_v52 }
 0x496   :  { %v741_v39 = vadd.f32 %v735_v36, %v1392_v54  ;;  %v36_v54 = vld [vmem:[%s1491_s2 + $0x88] sm:$0xff] }
 0x497   :  { %745 = vrot.lane.b32.xlu1 %v739_v37, %s1264_s7  ;;  %1183 = vmatpush3.bf16.msra.mxu0 %v1182_v51  ;;  %v1185_v56 = vpack.c.bf16 %v37_v55, %v36_v54 }
 0x498   :  { %753 = vrot.lane.b32.xlu0 %v741_v39, %s1265_s8  ;;  %1184 = vmatprep.subr.bf16.mxu0 %v1258_v6 }
 0x49b   :  { %755 = vrot.lane.b32.xlu1 %v742_v40, %s1265_s8  ;;  %1186 = vmatpush3.bf16.msra.mxu0 %v1185_v56  ;;  %s1266_s8 = smov [#allocation2]  }
 0x49c   :  { %1187 = vmatprep.subr.bf16.mxu0 %v1258_v6  ;;  %s947_s9 = sshll.u32 %s1266_s8, 4  ;;  %s948_s9 = int_to_ptr.vmem [resolvable:$true] %s947_s9 }
 0x49d   :  { %s1234_s10 = scalar_lea.vmem %s948_s9, 16  ;;  %s1238_s11 = scalar_lea.vmem %s948_s9, 32 }
 0x49e   :  { %p1235_p0 = scmp.ne.s32.totalorder %s948_s9, %s1234_s10  ;;  %p1239_p1 = scmp.lt.s32.totalorder %s948_s9, %s948_s9 }
 0x49f   :  { %1189 = vmatpush3.bf16.msra.mxu0 %v1188_v59  ;;  %p1240_p2 = scmp.lt.s32.totalorder %s1238_s11, %s1234_s10 }
 0x4a1   :  { %p1241_p3 = por %p1240_p2, %p1239_p1 }
 0x4a3   :  { %p1242_p4 = pnand %p1241_p3, %p1235_p0 }
 0x505   :  { %v748_v41 = vpop.permute.xlu1 %747 }
 0x506   :  { %v760_v48 = vsel %vm131_vm1, %v738_v46, %v748_v41 }
 0x509   :  { %v746_v44 = vpop.permute.xlu1 %745 }
 0x50a   :  { %v759_v45 = vsel %vm131_vm1, %v737_v43, %v746_v44  ;;  %v754_v8 = vpop.permute.xlu0 %753 }
 0x50b   :  { %v761_v47 = vsel %vm409_vm4, %v759_v45, %v754_v8 }
 0x50c   :  { %1119 = vmatprep.mubr.msk.f32.mxu1 %vm502_vm5, %v761_v47 }
 0x50d   :  { %v756_v49 = vpop.permute.xlu1 %755 }
 0x50e   :  { %v762_v50 = vsel %vm409_vm4, %v760_v48, %v756_v49 }
 0x50f   :  { %1120 = vmatmul.mubr.msk.f32.vlgmr.msra.gmra.mrb[10].mxu1 %vm502_vm5, %v762_v50 }
 0x5e2   :  { %v1121_v61 = vpop.f32.mrb[10].mxu1 }
 0x5e3   :  { %v845_v62 = vadd.f32 %v1121_v61, %v985_v60  ;;  %v839_v0 = vpop.f32.mrb[11].mxu1 }
 0x5e4   :  { %v840_v1 = vadd.f32 %v985_v60, %v839_v0 }
 0x5e5   :  { %vm849_vm6 = vcmp.gt.f32.partialorder %v845_v62, 0.0  ;;  %v851_v63 = vmul.f32 0.2, %v845_v62 }
 0x5e6   :  { %vm848_vm7 = vcmp.gt.f32.partialorder %v840_v1, 0.0  ;;  %v850_v2 = vmul.f32 0.2, %v840_v1 }
 0x5e7   :  { %v853_v3 = vsel %vm849_vm6, %v845_v62, %v851_v63 }
 0x5e8   :  { %v855_v4 = vsel %vm502_vm5, %v853_v3, 0.0  ;;  %v852_v5 = vsel %vm848_vm7, %v840_v1, %v850_v2 }
 0x5e9   :  { %v854_v9 = vsel %vm502_vm5, %v852_v5, 0.0 }
 0x5ea   :  { %v856_v6 = vadd.f32 %v855_v4, %v854_v9 }
 0x5ec   :  { %v857_v11 = vrot.slane %v856_v6, 4 }
 0x5ee   :  { %v858_v12 = vadd.f32 %v857_v11, %v856_v6 }
 0x5f0   :  { %v859_v14 = vrot.slane %v858_v12, 2 }
 0x5f2   :  { %v860_v15 = vadd.f32 %v859_v14, %v858_v12 }
 0x5f4   :  { %v861_v16 = vrot.slane %v860_v15, 1 }
 0x5f6   :  { %v862_v17 = vadd.f32 %v861_v16, %v860_v15 }
 0x5f8   :  { %v864_v19 = vmul.f32 0.0625, %v862_v17 }
 0x5fa   :  { %1232 = vtanh.f32 %v864_v19 }
 0x604   :  { %v1233_v20 = vpop.eup %1232 }
 0x605   :  { %1135 = vmatmul.mubr.msk.f32.vlgmr.msra.gmra.mrb[10].mxu0 %vm502_vm5, %v1233_v20 }
 0x6d8   :  { %v935_v18 = vpop.f32.mrb[10].mxu0 }
 0x6d9   :  { %v936_v21 = vadd.f32 %v935_v18, %v40_v13  ;;  %v1136_v22 = vpop.f32.mrb[11].mxu0 }
 0x6db   :  { %940 = vst.msk [vmem:[#allocation2] sm:$0x1] %vm939_vm8, %v936_v21 }
 0x6dc   :  { %1245 = shalt.err (!%p1242_p4)
}
 0x6dd   :  { %s1246_s2 = scalar_lea.hbm %s1492_s3, 16 }
 0x6de   :  { %p1247_p5 = scmp.ne.s32.totalorder %s1492_s3, %s1246_s2  ;;  %p1250_p6 = scmp.lt.u32.totalorder %s1246_s2, %s1492_s3 }
 0x6e0   :  { %p1252_p7 = pnand %p1250_p6, %p1247_p5 }
 0x6e2   :  { %1255 = shalt.err (!%p1252_p7)
}
 0x6e3   :  { %950 = dma.vmem_to_hbm [thread:$0]  %s948_s9, 16, %s1492_s3, [#allocation3]  }
 0x6e4   :  { %1256 = dma.done.wait [#allocation3], 16  }
 0x6e5   :  { %1257 = vsyncadd [#allocation3], 4294967280 }
 0x6e6   :  { %954 = vsyncpa [#allocation3], 1 }

</bundles_post_ra>
